<compile_context>
chip_gen: v5e
topology: v5e:2x2
jax: 0.10.0
libtpu: 0.0.40
codegen_flags: <defaults>
</compile_context>

<pallas_src>
import jax
import jax.numpy as jnp
from jax.experimental import pallas as pl
from jax.experimental.pallas import tpu as pltpu

# Model dimensions implied by QConvModel (Flatten(start_dim=0) => batch must be 1).
C_IN, H, W = 4, 16, 16
C_PAD = 8                        # conv-0 input channels zero-padded to one sublane tile
C_MID = 8
HW = H * W                       # 256 spatial positions -> the 128-lane axis
F_HID, F_OUT = 32, 5
F_PAD = 16                       # pad F_OUT so C_MID * F_PAD == 128 (one vreg of lanes)
QMAX, QMIN = 63.0, -64.0         # 7-bit symmetric fake quant: n = 2**(7-1) - 1
EPS = 1e-8                       # guard against max|x| == 0


# --------------------------------------------------------------------------- #
# Host-side (one-time) parameter preparation: weight fake-quant, im2col weight
# flattening, 3x3 boundary masks, and the composed linear-6/8 block weight.
# --------------------------------------------------------------------------- #
def _sym_fake_quant(v):
    sf = jnp.maximum(jnp.max(jnp.abs(v)) / QMAX, EPS)
    return jnp.clip(jnp.round(v / sf), QMIN, QMAX) * sf, sf


def _flat_conv_weight(wq, cin):
    """(Cout, cin, 3, 3) -> (Cout, 9*C_PAD); wflat[co, t*C_PAD+ci] = wq[co, ci, kh, kw]."""
    w = jnp.transpose(wq, (2, 3, 0, 1)).reshape(9, C_MID, cin)      # [t, co, ci]
    w = jnp.pad(w, ((0, 0), (0, 0), (0, C_PAD - cin)))              # zero-pad ci -> 8
    return jnp.transpose(w, (1, 0, 2)).reshape(C_MID, 9 * C_PAD)


def prepare_params(params):
    """Input-independent prep, hoisted out of the jitted forward."""
    w0q, sf0 = _sym_fake_quant(params["w0"])
    w2q, sf2 = _sym_fake_quant(params["w2"])
    w6q, sf6 = _sym_fake_quant(params["w6"])
    w8q, sf8 = _sym_fake_quant(params["w8"])

    wt0f = _flat_conv_weight(w0q, C_IN)      # (8, 72)
    wt2f = _flat_conv_weight(w2q, C_MID)     # (8, 72)

    # 3x3 "same"-padding masks, stacked to match the in-kernel im2col row layout
    # (row t*8+c belongs to tap t = kh*3+kw; mask is channel-independent).
    p = jnp.arange(HW)
    hh, ww = p // W, p % W
    rows = []
    for kh in range(3):
        for kw in range(3):
            dh, dw = kh - 1, kw - 1
            ok = ((hh + dh >= 0) & (hh + dh < H) &
                  (ww + dw >= 0) & (ww + dw < W)).astype(jnp.float32)
            rows.append(jnp.broadcast_to(ok[None, :], (C_PAD, HW)))
    mask72 = jnp.concatenate(rows, axis=0)                           # (72, 256)

    # Compose linear '6' and '8' (no module between them in forward()):
    # out = flat @ (w6q.T @ w8q.T) + b6q @ w8q.T + b8q.
    w68 = jnp.einsum("fk,of->ko", w6q, w8q,
                     precision=jax.lax.Precision.HIGHEST)            # (512, 5)
    # torch flatten of (C, 8, 8): k = c*64 + i*8 + j.
    w68 = w68.reshape(C_MID, H // 2, W // 2, F_OUT)                  # [c, i, j, o]
    w68 = jnp.pad(w68, ((0, 0), (0, 0), (0, 0), (0, F_PAD - F_OUT)))
    w68 = jnp.transpose(w68, (1, 2, 0, 3)).reshape(
        (H // 2) * (W // 2), C_MID * F_PAD)                          # [i*8+j, c*16+o]
    # Pool anchor p = 32*i + 2*j must match the fused max over shifts {0,1,W,W+1}.
    ii, jj = jnp.meshgrid(jnp.arange(H // 2), jnp.arange(W // 2), indexing="ij")
    p_anchor = (2 * ii * W + 2 * jj).reshape(-1)                     # (64,)
    w68r = jnp.zeros((HW, C_MID * F_PAD), jnp.float32).at[p_anchor, :].set(w68)

    # Block-diagonal selection mask for the post-matmul channel reduction:
    # result row c only contributes columns [c*F_PAD, (c+1)*F_PAD).
    lane = jnp.arange(C_MID * F_PAD)
    dmask = (lane[None, :] // F_PAD ==
             jnp.arange(C_MID)[:, None]).astype(jnp.float32)         # (8, 128)

    return {
        "wsf": jnp.stack([sf0, sf2, sf6, sf8]).astype(jnp.float32),  # SMEM scalars
        "mask72": mask72, "wt0f": wt0f, "wt2f": wt2f,
        "w68r": w68r, "dmask": dmask, "w8t": w8q.T,                  # (32, 5)
        "b0": params["b0"].reshape(C_MID, 1),
        "b2": params["b2"].reshape(C_MID, 1),
        "b6": params["b6"].reshape(1, F_HID),
        "b8": params["b8"].reshape(1, F_OUT),
    }


# --------------------------------------------------------------------------- #
# pltpu.roll direction probe (one-time, not in the hot path).
# --------------------------------------------------------------------------- #
def _roll_matches_jnp():
    x = jnp.arange(8 * 128, dtype=jnp.float32).reshape(8, 128)

    def probe(x_ref, o_ref):
        o_ref[...] = pltpu.roll(x_ref[...], 1, axis=1)

    y = pl.pallas_call(
        probe,
        out_shape=jax.ShapeDtypeStruct((8, 128), jnp.float32),
        grid=(1,),
        in_specs=[pl.BlockSpec((8, 128), lambda i: (0, 0))],
        out_specs=pl.BlockSpec((8, 128), lambda i: (0, 0)),
    )(x)
    return bool(jnp.array_equal(y, jnp.roll(x, 1, axis=1)))


# --------------------------------------------------------------------------- #
# The fused kernel.
# --------------------------------------------------------------------------- #
def _make_fused_kernel(roll_like_jnp: bool):
    def shift(v, s):
        # y[:, p] = v[:, (p + s) mod HW]; wrapped lanes are always masked / zero-weighted.
        amt = (-s) % HW if roll_like_jnp else s % HW
        if amt == 0:
            return v
        return pltpu.roll(v, amt, axis=1)

    def kernel(wsf_ref, x_ref, mask_ref, wt0_ref, wt2_ref, w68_ref, dmask_ref,
               w8t_ref, b0_ref, b2_ref, b6_ref, b8_ref, o_ref):
        f32 = jnp.float32

        # ---- QuantAct: per-tensor symmetric 7-bit fake quant, scale in-kernel ----
        x = x_ref[...]                                            # (8, 256), rows 4-7 zero
        mx = jnp.max(jnp.abs(x), axis=1, keepdims=True)
        mx = jnp.max(mx, axis=0, keepdims=True)                   # (1, 1)
        p_sf = jnp.maximum(mx / QMAX, EPS)
        # exact division kept (not reciprocal*mul): bit-exact vs. the torch-style math
        xq = jnp.clip(jnp.round(x / p_sf), QMIN, QMAX) * p_sf

        def quant_bias(b, w_sf):
            sc = w_sf * p_sf                                      # bias_bit=7, w_sf*p_sf
            return jnp.clip(jnp.round(b / sc), QMIN, QMAX) * sc

        # ---- conv 3x3 (pad=1) as ONE MXU dot: stacked masked im2col tile ----------
        def conv3x3(v, w_ref, b_q):
            taps = []
            for kh in range(3):
                for kw in range(3):
                    taps.append(shift(v, (kh - 1) * W + (kw - 1)))
            patches = jnp.concatenate(taps, axis=0) * mask_ref[...]    # (72, 256)
            return jnp.dot(w_ref[...], patches,
                           preferred_element_type=f32) + b_q           # (8, 256)

        y0 = conv3x3(xq, wt0_ref, quant_bias(b0_ref[...], wsf_ref[0]))  # layer '0'
        y1 = conv3x3(y0, wt2_ref, quant_bias(b2_ref[...], wsf_ref[1]))  # layer '2'

        # ---- MaxPool2d(2,2) fused: max over the 4 window taps (anchors p=32i+2j) --
        pooled = jnp.maximum(jnp.maximum(y1, shift(y1, 1)),
                             jnp.maximum(shift(y1, W), shift(y1, W + 1)))

        # ---- Composed linear '6' + '8': one lane-dense (8,256)@(256,128) MXU dot --
        r = jnp.dot(pooled, w68_ref[...], preferred_element_type=f32)   # (8, 128)
        r = r * dmask_ref[...]                 # keep block-diagonal [c, c*16+o] entries
        # tree-sum lanes over the 8 channel blocks (direction-independent rotations)
        r = r + pltpu.roll(r, 4 * F_PAD, axis=1)
        r = r + pltpu.roll(r, 2 * F_PAD, axis=1)
        r = r + pltpu.roll(r, F_PAD, axis=1)
        red = jnp.sum(r, axis=0, keepdims=True)            # (1, 128); out at lanes [0:5)

        # bias path: b6q @ w8q.T + b8q   (scales depend on runtime p_sf)
        b68 = (jnp.dot(quant_bias(b6_ref[...], wsf_ref[2]), w8t_ref[...],
                       preferred_element_type=f32)
               + quant_bias(b8_ref[...], wsf_ref[3]))       # (1, 5)

        o_ref[...] = red[:, :F_OUT] + b68

    return kernel


def build_qconv_forward():
    kernel = _make_fused_kernel(_roll_matches_jnp())

    def vspec(shape):
        nd = len(shape)
        return pl.BlockSpec(shape, lambda i, _nd=nd: (0,) * _nd)

    fused = pl.pallas_call(
        kernel,
        out_shape=jax.ShapeDtypeStruct((1, F_OUT), jnp.float32),
        grid=(1,),
        in_specs=[
            pl.BlockSpec(memory_space=pltpu.MemorySpace.SMEM),    # wsf (4,) scalars
            vspec((C_PAD, HW)),                                   # x       (8, 256)
            vspec((9 * C_PAD, HW)),                               # mask72  (72, 256)
            vspec((C_MID, 9 * C_PAD)),                            # wt0f    (8, 72)
            vspec((C_MID, 9 * C_PAD)),                            # wt2f    (8, 72)
            vspec((HW, C_MID * F_PAD)),                           # w68r    (256, 128)
            vspec((C_MID, C_MID * F_PAD)),                        # dmask   (8, 128)
            vspec((F_HID, F_OUT)),                                # w8t     (32, 5)
            vspec((C_MID, 1)),                                    # b0
            vspec((C_MID, 1)),                                    # b2
            vspec((1, F_HID)),                                    # b6
            vspec((1, F_OUT)),                                    # b8
        ],
        out_specs=vspec((1, F_OUT)),
        compiler_params=pltpu.CompilerParams(
            dimension_semantics=("arbitrary",)),
    )

    def forward(x_nchw, prep):
        # Flatten(start_dim=0) folds batch into features -> batch must be 1.
        assert x_nchw.shape == (1, C_IN, H, W)
        x2 = x_nchw.reshape(C_IN, HW)                         # NCHW batch-1 -> (C, H*W)
        xp = jnp.pad(x2, ((0, C_PAD - C_IN), (0, 0)))         # sublane-tile pad 4 -> 8
        out = fused(prep["wsf"], xp, prep["mask72"], prep["wt0f"], prep["wt2f"],
                    prep["w68r"], prep["dmask"], prep["w8t"],
                    prep["b0"], prep["b2"], prep["b6"], prep["b8"])
        return out.reshape(F_OUT)

    return jax.jit(forward)


# --------------------------------------------------------------------------- #
# Pure-JAX (non-Pallas) reference of the same fake-quantized forward pass.
# --------------------------------------------------------------------------- #
def reference_forward(x, params):
    def fq(v, sf):
        return jnp.clip(jnp.round(v / sf), QMIN, QMAX) * sf

    p_sf = jnp.maximum(jnp.max(jnp.abs(x)) / QMAX, EPS)
    xq = fq(x, p_sf)

    def conv(v, w, b):
        wq, wsf = _sym_fake_quant(w)
        bq = fq(b, wsf * p_sf)
        y = jax.lax.conv_general_dilated(
            v, wq, (1, 1), ((1, 1), (1, 1)),
            dimension_numbers=("NCHW", "OIHW", "NCHW"),
            precision=jax.lax.Precision.HIGHEST)
        return y + bq[None, :, None, None]

    y = conv(xq, params["w0"], params["b0"])
    y = conv(y, params["w2"], params["b2"])
    n, c, h, w = y.shape
    y = y.reshape(n, c, h // 2, 2, w // 2, 2).max(axis=(3, 5))    # MaxPool2d(2, 2)
    flat = y.reshape(-1)                                          # Flatten(start_dim=0)

    def lin(v, wt, b):
        wq, wsf = _sym_fake_quant(wt)
        bq = fq(b, wsf * p_sf)
        return jnp.dot(v, wq.T, precision=jax.lax.Precision.HIGHEST) + bq

    hid = lin(flat, params["w6"], params["b6"])
    return lin(hid, params["w8"], params["b8"])


# --------------------------------------------------------------------------- #
if __name__ == "__main__":
    key = jax.random.PRNGKey(0)
    ks = jax.random.split(key, 9)

    # conv0: 4->8 (3x3, pad 1), conv2: 8->8, pool 2x2 -> 8*8*8=512, 512->32, 32->5.
    x = jax.random.normal(ks[0], (1, C_IN, H, W), dtype=jnp.float32)
    params = {
        "w0": 0.10 * jax.random.normal(ks[1], (C_MID, C_IN, 3, 3), jnp.float32),
        "b0": 0.10 * jax.random.normal(ks[2], (C_MID,), jnp.float32),
        "w2": 0.10 * jax.random.normal(ks[3], (C_MID, C_MID, 3, 3), jnp.float32),
        "b2": 0.10 * jax.random.normal(ks[4], (C_MID,), jnp.float32),
        "w6": 0.05 * jax.random.normal(ks[5], (F_HID, C_MID * (H // 2) * (W // 2)),
                                       jnp.float32),
        "b6": 0.05 * jax.random.normal(ks[6], (F_HID,), jnp.float32),
        "w8": 0.05 * jax.random.normal(ks[7], (F_OUT, F_HID), jnp.float32),
        "b8": 0.05 * jax.random.normal(ks[8], (F_OUT,), jnp.float32),
    }

    prep = prepare_params(params)        # one-time: weight quant + layout folding
    forward = build_qconv_forward()      # single fused Pallas kernel, jitted

    y = forward(x, prep)
    jax.block_until_ready(y)

    y_ref = reference_forward(x, params)
    max_err = float(jnp.max(jnp.abs(y - y_ref)))
    assert y.shape == (F_OUT,) and y.dtype == jnp.float32
    assert max_err < 5e-3, f"kernel/reference mismatch: {max_err}"
    print("KERNEL_OK")
</pallas_src>

<mosaic_0001>
module attributes {stable_mosaic.version = 11 : i64} {
  func.func @probe(%arg0: i32, %arg1: memref<8x128xf32, #tpu.memory_space<vmem>>, %arg2: memref<8x128xf32, #tpu.memory_space<vmem>>) attributes {dimension_semantics = [#tpu.dimension_semantics<arbitrary>], iteration_bounds = array<i64: 1>, scalar_prefetch = 0 : i64, scratch_operands = 0 : i64, tpu.core_type = #tpu.core_type<tc>, window_params = [{pipeline_mode = #tpu.pipeline_mode<synchronous>, transform_indices = @transform_0, window_bounds = array<i64: 8, 128>}, {pipeline_mode = #tpu.pipeline_mode<synchronous>, transform_indices = @transform_1, window_bounds = array<i64: 8, 128>}]} {
    %c0 = arith.constant 0 : index
    %c0_0 = arith.constant 0 : index
    %0 = vector.load %arg1[%c0, %c0_0] : memref<8x128xf32, #tpu.memory_space<vmem>>, vector<8x128xf32>
    %c1_i32 = arith.constant 1 : i32
    %1 = tpu.dynamic_rotate %0 by %c1_i32 dim 1 : vector<8x128xf32>, i32 -> vector<8x128xf32>
    %c0_1 = arith.constant 0 : index
    %c0_2 = arith.constant 0 : index
    %2 = vector.load %arg2[%c0_1, %c0_2] : memref<8x128xf32, #tpu.memory_space<vmem>>, vector<8x128xf32>
    tpu.vector_store %arg2[%c0_1, %c0_2], %1 {strides = array<i32>} : memref<8x128xf32, #tpu.memory_space<vmem>>, vector<8x128xf32>,
    return
  }
  func.func @transform_0(%arg0: i32) -> (i32, i32) {
    %c0_i32 = arith.constant 0 : i32
    %c0_i32_0 = arith.constant 0 : i32
    %c0_i32_1 = arith.constant 0 : i32
    return %c0_i32, %c0_i32_0 : i32, i32
  }
  func.func @transform_1(%arg0: i32) -> (i32, i32) {
    %c0_i32 = arith.constant 0 : i32
    %c0_i32_0 = arith.constant 0 : i32
    %c0_i32_1 = arith.constant 0 : i32
    return %c0_i32, %c0_i32_0 : i32, i32
  }
}

</mosaic_0001>

<bundles_post_ra>
// kernel: tpu_custom_call.1
= control target key start
LH: loop header
LB: loop body
LE: loop exit
PB: predicated region body
PF: predicated region fallthrough
CT: control target
= control target key end

     0   :  { %6 = vsyncpa [#allocation3], 0  ;;  %s118_s0 = inlined_call_operand.hbm [shape: f32[8,128], index: 0, kind: input, shape index: {}]   ;;  %s119_s1 = inlined_call_operand.hbm [shape: f32[8,128], index: 1, kind: output, shape index: {}]  }
   0x1   :  { %7 = vsyncpa [#allocation4], 0  ;;  %s13_s8 = sshll.u32 %s118_s0, 4  ;;  %s99_s9 = smov [#allocation2]   ;;  %s14_s8 = int_to_ptr.hbm [resolvable:$true] %s13_s8 }
   0x2   :  { %s15_s10 = sshll.u32 %s99_s9, 4  ;;  %s16_s10 = int_to_ptr.vmem [resolvable:$true] %s15_s10 }
   0x3   :  { %18 = dma.hbm_to_vmem [thread:$0]  %s14_s8, 128, %s16_s10, [#allocation3]  }
   0x4   :  { %95 = dma.done.wait [#allocation3], 128  }
   0x5   :  { %96 = vsyncadd [#allocation3], 4294967168  ;;  %v23_v0 = vld [vmem:[#allocation2] sm:$0xff]  ;;  %s100_s11 = smov 1   ;;  %s101_s12 = smov [#allocation5]  }
   0x6   :  { %24 = vrot.lane.b32.xlu0 %v23_v0, %s100_s11  ;;  %s32_s13 = sshll.u32 %s101_s12, 4  ;;  %s34_s16 = sshll.u32 %s119_s1, 4  ;;  %s33_s13 = int_to_ptr.vmem [resolvable:$true] %s32_s13  ;;  %s35_s16 = int_to_ptr.hbm [resolvable:$true] %s34_s16 }
  0x78   :  { %v25_v1 = vpop.permute.xlu0 %24 }
  0x79   :  { %26 = vst [vmem:[#allocation5] sm:$0xff] %v25_v1 }
  0x7a   :  { %37 = dma.vmem_to_hbm [thread:$0]  %s33_s13, 128, %s35_s16, [#allocation4]  }
  0x7b   :  { %97 = dma.done.wait [#allocation4], 128  }
  0x7c   :  { %98 = vsyncadd [#allocation4], 4294967168 }
  0x7d   :  { %42 = vsyncpa [#allocation3], 1 }
  0x7e   :  { %43 = vsyncpa [#allocation4], 1 }

</bundles_post_ra>
